<compile_context>
chip_gen: v6e
topology: v6e:2x2x1
jax: 0.10.0
libtpu: 0.0.40
codegen_flags: <defaults>
</compile_context>

<pallas_src>
import functools

import jax
import jax.numpy as jnp
from jax.experimental import pallas as pl
from jax.experimental.pallas import tpu as pltpu


def _round_up(x, m):
    return (x + m - 1) // m * m


def _choose_tiles(n):
    """Returns (row_tile, col_tile, padded_n)."""
    if n <= 512:
        t = _round_up(n, 8)          # single block; block == full array dims
        return t, t, t
    tr, tc = 256, 512                # fits comfortably in scoped VMEM on all gens
    return tr, tc, _round_up(n, 512)


def _supcon_kernel(labr_ref, labc_ref, fr_ref, fc_ref, loss_ref,
                   m_sc, l_sc, sml_sc, mp_sc, *,
                   inv_temp, loss_coef, n_valid):
    # labr_ref: [TR, 1] int32   row (anchor) labels
    # labc_ref: [1, TC] int32   column (contrast) labels
    # fr_ref:   [TR, D] f32     anchor feature rows
    # fc_ref:   [TC, D] f32     contrast feature rows
    # loss_ref: [TR, 1] f32     per-row loss (written on last column block)
    # scratch:  m (running max), l (running sum-exp), sml (sum mask*logits),
    #           mp (num positive pairs)   -- all [TR, 1] f32
    tr = fr_ref.shape[0]
    tc = fc_ref.shape[0]
    r = pl.program_id(0)
    c = pl.program_id(1)

    @pl.when(c == 0)
    def _init():
        m_sc[...] = jnp.full_like(m_sc, -1e30)
        l_sc[...] = jnp.zeros_like(l_sc)
        sml_sc[...] = jnp.zeros_like(sml_sc)
        mp_sc[...] = jnp.zeros_like(mp_sc)

    # logits tile = (F_row / T) @ F_col^T, contraction over D (no transpose copy).
    fr = fr_ref[...] * jnp.float32(inv_temp)                       # [TR, D]
    s = jax.lax.dot_general(fr, fc_ref[...],
                            dimension_numbers=(((1,), (1,)), ((), ())),
                            preferred_element_type=jnp.float32)    # [TR, TC]

    # Global indices for diagonal (self-contrast) removal and padding validity.
    grow = r * tr + jax.lax.broadcasted_iota(jnp.int32, (tr, tc), 0)
    gcol = c * tc + jax.lax.broadcasted_iota(jnp.int32, (tr, tc), 1)
    keep = jnp.logical_and(gcol < n_valid, grow != gcol)

    # Positive (same-label) mask built on the fly -- no HBM mask traffic.
    pos = jnp.logical_and(keep, labr_ref[...] == labc_ref[...]).astype(jnp.float32)

    # Online log-sum-exp over columns for the denominator (diag/pad excluded).
    s_masked = jnp.where(keep, s, -1e30)                           # [TR, TC]
    m_prev = m_sc[...]
    m_new = jnp.maximum(m_prev, jnp.max(s_masked, axis=1, keepdims=True))
    alpha = jnp.exp(m_prev - m_new)
    p = jnp.exp(s_masked - m_new)          # masked entries -> exp(-huge) == 0
    l_sc[...] = alpha * l_sc[...] + jnp.sum(p, axis=1, keepdims=True)
    m_sc[...] = m_new

    # Shift-invariant positive-pair accumulators (use raw logits; pos==0 on mask).
    sml_sc[...] += jnp.sum(pos * s, axis=1, keepdims=True)
    mp_sc[...] += jnp.sum(pos, axis=1, keepdims=True)

    @pl.when(c == pl.num_programs(1) - 1)
    def _finalize():
        # sum_j mask_ij * log_prob_ij == sum_j mask_ij*s_ij - npos_i * lse_i
        lse = m_sc[...] + jnp.log(l_sc[...])                       # [TR, 1]
        npos = mp_sc[...]
        npos_g = jnp.where(npos < 1e-6, 1.0, npos)
        mean_log_prob_pos = (sml_sc[...] - npos * lse) / npos_g
        row_loss = jnp.float32(loss_coef) * mean_log_prob_pos      # [TR, 1]
        row_valid = (r * tr +
                     jax.lax.broadcasted_iota(jnp.int32, (tr, 1), 0)) < n_valid
        loss_ref[...] = jnp.where(row_valid, row_loss, 0.0)


def supcon_loss(features, labels=None, mask=None, *, temperature=0.07,
                contrast_mode="all", base_temperature=0.07):
    """JAX/Pallas equivalent of SupConLoss.forward ('all' mode, label/SimCLR mask).

    features: [bsz, n_views, dim] (or higher rank; trailing dims flattened)
    labels:   optional [bsz] int labels (None => SimCLR / identity mask)
    """
    if features.ndim < 3:
        raise ValueError("`features` needs to be [bsz, n_views, ...]")
    if features.ndim > 3:
        features = features.reshape(features.shape[0], features.shape[1], -1)

    bsz, n_views, dim = features.shape
    features = features.astype(jnp.float32)

    if labels is not None and mask is not None:
        raise ValueError("Cannot define both `labels` and `mask`")
    if mask is not None:
        # TODO(synk): explicit arbitrary [bsz, bsz] `mask` argument (possibly
        # asymmetric) is not expressible as an in-kernel label compare; not implemented.
        raise NotImplementedError("explicit `mask` argument not implemented")
    if labels is None:
        labels = jnp.arange(bsz, dtype=jnp.int32)   # eye(bsz) == equality of arange
    else:
        labels = jnp.asarray(labels).reshape(-1)
        if labels.shape[0] != bsz:
            raise ValueError("Num of labels does not match num of features")
    labels = labels.astype(jnp.int32)

    if contrast_mode == "one":
        # TODO(synk): contrast_mode='one' (single anchor view) not implemented.
        raise NotImplementedError("contrast_mode='one' not implemented")
    if contrast_mode != "all":
        raise ValueError(f"Unknown mode: {contrast_mode}")

    n = n_views * bsz
    # contrast_feature rows ordered view-major (row = v * bsz + b), matching
    # torch.cat(torch.unbind(features, dim=1), dim=0)
    contrast_feature = jnp.transpose(features, (1, 0, 2)).reshape(n, dim)
    full_labels = jnp.tile(labels, n_views)                        # [n]

    tr, tc, n_pad = _choose_tiles(n)
    feat = jnp.zeros((n_pad, dim), jnp.float32).at[:n, :].set(contrast_feature)
    lab = jnp.full((n_pad,), -1, jnp.int32).at[:n].set(full_labels)
    lab_row = lab.reshape(n_pad, 1)
    lab_col = lab.reshape(1, n_pad)

    kernel = functools.partial(
        _supcon_kernel,
        inv_temp=1.0 / float(temperature),
        loss_coef=-(float(temperature) / float(base_temperature)),
        n_valid=n,
    )

    grid = (n_pad // tr, n_pad // tc)
    row_losses = pl.pallas_call(
        kernel,
        out_shape=jax.ShapeDtypeStruct((n_pad, 1), jnp.float32),
        grid_spec=pltpu.PrefetchScalarGridSpec(
            num_scalar_prefetch=0,
            grid=grid,
            in_specs=[
                pl.BlockSpec((tr, 1), lambda r, c: (r, 0)),      # row labels
                pl.BlockSpec((1, tc), lambda r, c: (0, c)),      # col labels
                pl.BlockSpec((tr, dim), lambda r, c: (r, 0)),    # anchor feature rows
                pl.BlockSpec((tc, dim), lambda r, c: (c, 0)),    # contrast feature rows
            ],
            out_specs=pl.BlockSpec((tr, 1), lambda r, c: (r, 0)),
            scratch_shapes=[
                pltpu.VMEM((tr, 1), jnp.float32),   # running max
                pltpu.VMEM((tr, 1), jnp.float32),   # running sum-exp
                pltpu.VMEM((tr, 1), jnp.float32),   # sum(mask * logits)
                pltpu.VMEM((tr, 1), jnp.float32),   # num positive pairs
            ],
        ),
        compiler_params=pltpu.CompilerParams(
            dimension_semantics=("parallel", "arbitrary")),
    )(lab_row, lab_col, feat, feat)

    return jnp.sum(row_losses) / jnp.float32(n)


def _supcon_loss_ref(features, labels, *, temperature=0.07, base_temperature=0.07):
    """Pure-JAX reference for verification (mirrors the PyTorch code)."""
    bsz, n_views, dim = features.shape
    labels = labels.reshape(-1, 1)
    mask = (labels == labels.T).astype(jnp.float32)
    contrast_feature = jnp.transpose(features, (1, 0, 2)).reshape(n_views * bsz, dim)
    anchor_feature = contrast_feature
    logits = anchor_feature @ contrast_feature.T / temperature
    logits = logits - jnp.max(logits, axis=1, keepdims=True)
    mask = jnp.tile(mask, (n_views, n_views))
    n = n_views * bsz
    logits_mask = 1.0 - jnp.eye(n, dtype=jnp.float32)
    mask = mask * logits_mask
    exp_logits = jnp.exp(logits) * logits_mask
    log_prob = logits - jnp.log(exp_logits.sum(1, keepdims=True))
    mask_pos = mask.sum(1)
    mask_pos = jnp.where(mask_pos < 1e-6, 1.0, mask_pos)
    mean_log_prob_pos = (mask * log_prob).sum(1) / mask_pos
    loss = -(temperature / base_temperature) * mean_log_prob_pos
    return loss.reshape(n_views, bsz).mean()


if __name__ == "__main__":
    key = jax.random.PRNGKey(0)

    # Small case (single-block path): bsz=8, n_views=2, dim=32  -> N=16
    k_feat, k_lab, key = jax.random.split(key, 3)
    bsz, n_views, dim = 8, 2, 32
    feats = jax.random.normal(k_feat, (bsz, n_views, dim), dtype=jnp.float32)
    feats = feats / jnp.linalg.norm(feats, axis=-1, keepdims=True)
    labels = jax.random.randint(k_lab, (bsz,), 0, 3)

    loss = jax.block_until_ready(supcon_loss(feats, labels=labels))
    ref = _supcon_loss_ref(feats, labels)
    assert jnp.allclose(loss, ref, rtol=5e-4, atol=5e-4), (loss, ref)

    # Medium case (tiled path with row/col blocking and padding): N=544 > 512
    k_feat2, k_lab2, key = jax.random.split(key, 3)
    bsz2, n_views2, dim2 = 272, 2, 32
    feats2 = jax.random.normal(k_feat2, (bsz2, n_views2, dim2), dtype=jnp.float32)
    feats2 = feats2 / jnp.linalg.norm(feats2, axis=-1, keepdims=True)
    labels2 = jax.random.randint(k_lab2, (bsz2,), 0, 5)

    loss2 = jax.block_until_ready(supcon_loss(feats2, labels=labels2))
    ref2 = _supcon_loss_ref(feats2, labels2)
    assert jnp.allclose(loss2, ref2, rtol=5e-4, atol=5e-4), (loss2, ref2)

    print("KERNEL_OK")
</pallas_src>

<mosaic_0001>
module attributes {stable_mosaic.version = 11 : i64} {
  func.func @_supcon_kernel(%arg0: i32, %arg1: i32, %arg2: memref<16x1xi32, #tpu.memory_space<vmem>>, %arg3: memref<1x16xi32, #tpu.memory_space<vmem>>, %arg4: memref<16x32xf32, #tpu.memory_space<vmem>>, %arg5: memref<16x32xf32, #tpu.memory_space<vmem>>, %arg6: memref<16x1xf32, #tpu.memory_space<vmem>>, %arg7: memref<16x1xf32, #tpu.memory_space<vmem>>, %arg8: memref<16x1xf32, #tpu.memory_space<vmem>>, %arg9: memref<16x1xf32, #tpu.memory_space<vmem>>, %arg10: memref<16x1xf32, #tpu.memory_space<vmem>>) attributes {dimension_semantics = [#tpu.dimension_semantics<parallel>, #tpu.dimension_semantics<arbitrary>], iteration_bounds = array<i64: 1, 1>, scalar_prefetch = 0 : i64, scratch_operands = 4 : i64, tpu.core_type = #tpu.core_type<tc>, window_params = [{transform_indices = @transform_0, window_bounds = array<i64: 16, 1>}, {transform_indices = @transform_1, window_bounds = array<i64: 1, 16>}, {transform_indices = @transform_2, window_bounds = array<i64: 16, 32>}, {transform_indices = @transform_3, window_bounds = array<i64: 16, 32>}, {transform_indices = @transform_4, window_bounds = array<i64: 16, 1>}]} {
    %c0_i32 = arith.constant 0 : i32
    %0 = arith.cmpi eq, %arg1, %c0_i32 : i32
    %1 = arith.extui %0 : i1 to i32
    %c0_i32_0 = arith.constant 0 : i32
    %2 = arith.cmpi ne, %1, %c0_i32_0 : i32
    scf.if %2 {
      %cst_34 = arith.constant -1.000000e+30 : f32
      %60 = vector.broadcast %cst_34 : f32 to vector<16x1xf32>
      %c0_35 = arith.constant 0 : index
      %c0_36 = arith.constant 0 : index
      %61 = vector.load %arg7[%c0_35, %c0_36] : memref<16x1xf32, #tpu.memory_space<vmem>>, vector<16x1xf32>
      tpu.vector_store %arg7[%c0_35, %c0_36], %60 {strides = array<i32>} : memref<16x1xf32, #tpu.memory_space<vmem>>, vector<16x1xf32>,
      %cst_37 = arith.constant 0.000000e+00 : f32
      %62 = vector.broadcast %cst_37 : f32 to vector<16x1xf32>
      %c0_38 = arith.constant 0 : index
      %c0_39 = arith.constant 0 : index
      %63 = vector.load %arg8[%c0_38, %c0_39] : memref<16x1xf32, #tpu.memory_space<vmem>>, vector<16x1xf32>
      tpu.vector_store %arg8[%c0_38, %c0_39], %62 {strides = array<i32>} : memref<16x1xf32, #tpu.memory_space<vmem>>, vector<16x1xf32>,
      %cst_40 = arith.constant 0.000000e+00 : f32
      %64 = vector.broadcast %cst_40 : f32 to vector<16x1xf32>
      %c0_41 = arith.constant 0 : index
      %c0_42 = arith.constant 0 : index
      %65 = vector.load %arg9[%c0_41, %c0_42] : memref<16x1xf32, #tpu.memory_space<vmem>>, vector<16x1xf32>
      tpu.vector_store %arg9[%c0_41, %c0_42], %64 {strides = array<i32>} : memref<16x1xf32, #tpu.memory_space<vmem>>, vector<16x1xf32>,
      %cst_43 = arith.constant 0.000000e+00 : f32
      %66 = vector.broadcast %cst_43 : f32 to vector<16x1xf32>
      %c0_44 = arith.constant 0 : index
      %c0_45 = arith.constant 0 : index
      %67 = vector.load %arg10[%c0_44, %c0_45] : memref<16x1xf32, #tpu.memory_space<vmem>>, vector<16x1xf32>
      tpu.vector_store %arg10[%c0_44, %c0_45], %66 {strides = array<i32>} : memref<16x1xf32, #tpu.memory_space<vmem>>, vector<16x1xf32>,
    } else {
    }
    %c0 = arith.constant 0 : index
    %c0_1 = arith.constant 0 : index
    %3 = vector.load %arg4[%c0, %c0_1] : memref<16x32xf32, #tpu.memory_space<vmem>>, vector<16x32xf32>
    %cst = arith.constant 14.2857141 : f32
    %4 = vector.broadcast %cst : f32 to vector<16x32xf32>
    %5 = arith.mulf %3, %4 : vector<16x32xf32>
    %c0_2 = arith.constant 0 : index
    %c0_3 = arith.constant 0 : index
    %6 = vector.load %arg5[%c0_2, %c0_3] : memref<16x32xf32, #tpu.memory_space<vmem>>, vector<16x32xf32>
    %cst_4 = arith.constant dense<0.000000e+00> : vector<16x16xf32>
    %7 = tpu.matmul %5, %6, %cst_4 {dimension_numbers = #tpu.dot_dimension_numbers<[1], [1], [0], [0], [0, 0, 1, 0], [], []>} : vector<16x32xf32>, vector<16x32xf32>, vector<16x16xf32> -> vector<16x16xf32>
    %c16_i32 = arith.constant 16 : i32
    %8 = arith.muli %arg0, %c16_i32 : i32
    %9 = tpu.iota {dimensions = array<i32: 0>} : vector<16x16xi32>
    %10 = vector.broadcast %8 : i32 to vector<16x16xi32>
    %11 = arith.addi %10, %9 : vector<16x16xi32>
    %c16_i32_5 = arith.constant 16 : i32
    %12 = arith.muli %arg1, %c16_i32_5 : i32
    %13 = tpu.iota {dimensions = array<i32: 1>} : vector<16x16xi32>
    %14 = vector.broadcast %12 : i32 to vector<16x16xi32>
    %15 = arith.addi %14, %13 : vector<16x16xi32>
    %c16_i32_6 = arith.constant 16 : i32
    %16 = vector.broadcast %c16_i32_6 : i32 to vector<16x16xi32>
    %17 = arith.cmpi slt, %15, %16 : vector<16x16xi32>
    %18 = arith.cmpi ne, %11, %15 : vector<16x16xi32>
    %19 = arith.andi %17, %18 : vector<16x16xi1>
    %c0_7 = arith.constant 0 : index
    %c0_8 = arith.constant 0 : index
    %20 = vector.load %arg2[%c0_7, %c0_8] : memref<16x1xi32, #tpu.memory_space<vmem>>, vector<16x1xi32>
    %c0_9 = arith.constant 0 : index
    %c0_10 = arith.constant 0 : index
    %21 = vector.load %arg3[%c0_9, %c0_10] : memref<1x16xi32, #tpu.memory_space<vmem>>, vector<1x16xi32>
    %22 = vector.broadcast %20 : vector<16x1xi32> to vector<16x16xi32>
    %23 = vector.broadcast %21 : vector<1x16xi32> to vector<16x16xi32>
    %24 = arith.cmpi eq, %22, %23 : vector<16x16xi32>
    %25 = arith.andi %19, %24 : vector<16x16xi1>
    %26 = arith.extui %25 : vector<16x16xi1> to vector<16x16xi32>
    %27 = arith.sitofp %26 : vector<16x16xi32> to vector<16x16xf32>
    %cst_11 = arith.constant -1.000000e+30 : f32
    %28 = vector.broadcast %cst_11 : f32 to vector<16x16xf32>
    %29 = arith.select %19, %7, %28 : vector<16x16xi1>, vector<16x16xf32>
    %c0_12 = arith.constant 0 : index
    %c0_13 = arith.constant 0 : index
    %30 = vector.load %arg7[%c0_12, %c0_13] : memref<16x1xf32, #tpu.memory_space<vmem>>, vector<16x1xf32>
    %cst_14 = arith.constant dense<0xFF800000> : vector<16xf32>
    %31 = vector.multi_reduction <maximumf>, %29, %cst_14 [1] : vector<16x16xf32> to vector<16xf32>
    %32 = vector.shape_cast %31 : vector<16xf32> to vector<16x1xf32>
    %33 = arith.maximumf %30, %32 : vector<16x1xf32>
    %34 = arith.subf %30, %33 : vector<16x1xf32>
    %35 = math.exp %34 : vector<16x1xf32>
    %36 = vector.broadcast %33 : vector<16x1xf32> to vector<16x16xf32>
    %37 = arith.subf %29, %36 : vector<16x16xf32>
    %38 = math.exp %37 : vector<16x16xf32>
    %c0_15 = arith.constant 0 : index
    %c0_16 = arith.constant 0 : index
    %39 = vector.load %arg8[%c0_15, %c0_16] : memref<16x1xf32, #tpu.memory_space<vmem>>, vector<16x1xf32>
    %40 = arith.mulf %35, %39 : vector<16x1xf32>
    %cst_17 = arith.constant dense<0.000000e+00> : vector<16xf32>
    %41 = vector.multi_reduction <add>, %38, %cst_17 [1] : vector<16x16xf32> to vector<16xf32>
    %42 = vector.shape_cast %41 : vector<16xf32> to vector<16x1xf32>
    %43 = arith.addf %40, %42 : vector<16x1xf32>
    %c0_18 = arith.constant 0 : index
    %c0_19 = arith.constant 0 : index
    %44 = vector.load %arg8[%c0_18, %c0_19] : memref<16x1xf32, #tpu.memory_space<vmem>>, vector<16x1xf32>
    tpu.vector_store %arg8[%c0_18, %c0_19], %43 {strides = array<i32>} : memref<16x1xf32, #tpu.memory_space<vmem>>, vector<16x1xf32>,
    %c0_20 = arith.constant 0 : index
    %c0_21 = arith.constant 0 : index
    %45 = vector.load %arg7[%c0_20, %c0_21] : memref<16x1xf32, #tpu.memory_space<vmem>>, vector<16x1xf32>
    tpu.vector_store %arg7[%c0_20, %c0_21], %33 {strides = array<i32>} : memref<16x1xf32, #tpu.memory_space<vmem>>, vector<16x1xf32>,
    %c0_22 = arith.constant 0 : index
    %c0_23 = arith.constant 0 : index
    %46 = vector.load %arg9[%c0_22, %c0_23] : memref<16x1xf32, #tpu.memory_space<vmem>>, vector<16x1xf32>
    %47 = arith.mulf %27, %7 : vector<16x16xf32>
    %cst_24 = arith.constant dense<0.000000e+00> : vector<16xf32>
    %48 = vector.multi_reduction <add>, %47, %cst_24 [1] : vector<16x16xf32> to vector<16xf32>
    %49 = vector.shape_cast %48 : vector<16xf32> to vector<16x1xf32>
    %50 = arith.addf %46, %49 : vector<16x1xf32>
    %c0_25 = arith.constant 0 : index
    %c0_26 = arith.constant 0 : index
    %51 = vector.load %arg9[%c0_25, %c0_26] : memref<16x1xf32, #tpu.memory_space<vmem>>, vector<16x1xf32>
    tpu.vector_store %arg9[%c0_25, %c0_26], %50 {strides = array<i32>} : memref<16x1xf32, #tpu.memory_space<vmem>>, vector<16x1xf32>,
    %c0_27 = arith.constant 0 : index
    %c0_28 = arith.constant 0 : index
    %52 = vector.load %arg10[%c0_27, %c0_28] : memref<16x1xf32, #tpu.memory_space<vmem>>, vector<16x1xf32>
    %cst_29 = arith.constant dense<0.000000e+00> : vector<16xf32>
    %53 = vector.multi_reduction <add>, %27, %cst_29 [1] : vector<16x16xf32> to vector<16xf32>
    %54 = vector.shape_cast %53 : vector<16xf32> to vector<16x1xf32>
    %55 = arith.addf %52, %54 : vector<16x1xf32>
    %c0_30 = arith.constant 0 : index
    %c0_31 = arith.constant 0 : index
    %56 = vector.load %arg10[%c0_30, %c0_31] : memref<16x1xf32, #tpu.memory_space<vmem>>, vector<16x1xf32>
    tpu.vector_store %arg10[%c0_30, %c0_31], %55 {strides = array<i32>} : memref<16x1xf32, #tpu.memory_space<vmem>>, vector<16x1xf32>,
    %c0_i32_32 = arith.constant 0 : i32
    %57 = arith.cmpi eq, %arg1, %c0_i32_32 : i32
    %58 = arith.extui %57 : i1 to i32
    %c0_i32_33 = arith.constant 0 : i32
    %59 = arith.cmpi ne, %58, %c0_i32_33 : i32
    scf.if %59 {
      %c0_34 = arith.constant 0 : index
      %c0_35 = arith.constant 0 : index
      %60 = vector.load %arg7[%c0_34, %c0_35] : memref<16x1xf32, #tpu.memory_space<vmem>>, vector<16x1xf32>
      %c0_36 = arith.constant 0 : index
      %c0_37 = arith.constant 0 : index
      %61 = vector.load %arg8[%c0_36, %c0_37] : memref<16x1xf32, #tpu.memory_space<vmem>>, vector<16x1xf32>
      %62 = math.log %61 : vector<16x1xf32>
      %63 = arith.addf %60, %62 : vector<16x1xf32>
      %c0_38 = arith.constant 0 : index
      %c0_39 = arith.constant 0 : index
      %64 = vector.load %arg10[%c0_38, %c0_39] : memref<16x1xf32, #tpu.memory_space<vmem>>, vector<16x1xf32>
      %cst_40 = arith.constant 9.99999997E-7 : f32
      %65 = vector.broadcast %cst_40 : f32 to vector<16x1xf32>
      %66 = arith.cmpf olt, %64, %65 : vector<16x1xf32>
      %cst_41 = arith.constant 1.000000e+00 : f32
      %67 = vector.broadcast %cst_41 : f32 to vector<16x1xf32>
      %68 = arith.select %66, %67, %64 : vector<16x1xi1>, vector<16x1xf32>
      %c0_42 = arith.constant 0 : index
      %c0_43 = arith.constant 0 : index
      %69 = vector.load %arg9[%c0_42, %c0_43] : memref<16x1xf32, #tpu.memory_space<vmem>>, vector<16x1xf32>
      %70 = arith.mulf %64, %63 : vector<16x1xf32>
      %71 = arith.subf %69, %70 : vector<16x1xf32>
      %72 = arith.divf %71, %68 : vector<16x1xf32>
      %cst_44 = arith.constant -1.000000e+00 : f32
      %73 = vector.broadcast %cst_44 : f32 to vector<16x1xf32>
      %74 = arith.mulf %73, %72 : vector<16x1xf32>
      %c16_i32_45 = arith.constant 16 : i32
      %75 = arith.muli %arg0, %c16_i32_45 : i32
      %76 = tpu.iota {dimensions = array<i32: 0>} : vector<16x1xi32>
      %77 = vector.broadcast %75 : i32 to vector<16x1xi32>
      %78 = arith.addi %77, %76 : vector<16x1xi32>
      %c16_i32_46 = arith.constant 16 : i32
      %79 = vector.broadcast %c16_i32_46 : i32 to vector<16x1xi32>
      %80 = arith.cmpi slt, %78, %79 : vector<16x1xi32>
      %cst_47 = arith.constant 0.000000e+00 : f32
      %81 = vector.broadcast %cst_47 : f32 to vector<16x1xf32>
      %82 = arith.select %80, %74, %81 : vector<16x1xi1>, vector<16x1xf32>
      %c0_48 = arith.constant 0 : index
      %c0_49 = arith.constant 0 : index
      %83 = vector.load %arg6[%c0_48, %c0_49] : memref<16x1xf32, #tpu.memory_space<vmem>>, vector<16x1xf32>
      tpu.vector_store %arg6[%c0_48, %c0_49], %82 {strides = array<i32>} : memref<16x1xf32, #tpu.memory_space<vmem>>, vector<16x1xf32>,
    } else {
    }
    return
  }
  func.func @transform_0(%arg0: i32, %arg1: i32) -> (i32, i32) {
    %c0_i32 = arith.constant 0 : i32
    %c0_i32_0 = arith.constant 0 : i32
    return %arg0, %c0_i32 : i32, i32
  }
  func.func @transform_1(%arg0: i32, %arg1: i32) -> (i32, i32) {
    %c0_i32 = arith.constant 0 : i32
    %c0_i32_0 = arith.constant 0 : i32
    return %c0_i32, %arg1 : i32, i32
  }
  func.func @transform_2(%arg0: i32, %arg1: i32) -> (i32, i32) {
    %c0_i32 = arith.constant 0 : i32
    %c0_i32_0 = arith.constant 0 : i32
    return %arg0, %c0_i32 : i32, i32
  }
  func.func @transform_3(%arg0: i32, %arg1: i32) -> (i32, i32) {
    %c0_i32 = arith.constant 0 : i32
    %c0_i32_0 = arith.constant 0 : i32
    return %arg1, %c0_i32 : i32, i32
  }
  func.func @transform_4(%arg0: i32, %arg1: i32) -> (i32, i32) {
    %c0_i32 = arith.constant 0 : i32
    %c0_i32_0 = arith.constant 0 : i32
    return %arg0, %c0_i32 : i32, i32
  }
}

</mosaic_0001>

<bundles_post_ra>
// kernel: tpu_custom_call.1
= control target key start
LH: loop header
LB: loop body
LE: loop exit
PB: predicated region body
PF: predicated region fallthrough
CT: control target
= control target key end

     0   :  { %9 = vsyncpa [#allocation7], 0  ;;  %s360_s15 = smov [#allocation6]   ;;  %s461_s0 = inlined_call_operand.vmem [shape: s32[16,1], index: 0, kind: input, shape index: {}]   ;;  %s462_s1 = inlined_call_operand.vmem [shape: s32[1,16], index: 1, kind: input, shape index: {}]   ;;  %s463_s2 = inlined_call_operand.vmem [shape: f32[16,32], index: 2, kind: input, shape index: {}]   ;;  %s464_s3 = inlined_call_operand.hbm [shape: f32[16,32], index: 3, kind: input, shape index: {}]   ;;  %s465_s4 = inlined_call_operand.vmem [shape: f32[16,1], index: 4, kind: output, shape index: {}]  }
   0x1   :  { %s21_s16 = sshll.u32 %s360_s15, 4  ;;  %s22_s16 = int_to_ptr.vmem [resolvable:$true] %s21_s16 }
   0x2   :  { %s346_s17 = scalar_lea.vmem %s22_s16, 256  ;;  %p351_p1 = scmp.lt.s32.totalorder %s22_s16, %s22_s16 }
   0x3   :  { %p347_p0 = scmp.ne.s32.totalorder %s22_s16, %s346_s17  ;;  %p352_p2 = scmp.lt.s32.totalorder %s346_s17, %s346_s17 }
   0x5   :  { %p353_p3 = por %p352_p2, %p351_p1 }
   0x7   :  { %p354_p4 = pnand %p353_p3, %p347_p0 }
   0x9   :  { %357 = shalt.err (!%p354_p4)
}
   0xa   :  { %s361_s18 = smov 128   ;;  %s362_s19 = smov 8  }
   0xb   :  { %27 = dma.hbm_to_vmem [thread:$0]  %s464_s3, 256, %s22_s16, [#allocation7], %s361_s18, %s361_s18, %s362_s19  }
   0xc   :  { %358 = dma.done.wait [#allocation7], 256  }
   0xd   :  { %359 = vsyncadd [#allocation7], 4294967040  ;;  %vm50_vm0 = vcmask 261120   ;;  %v49_v0 = vld [vmem:[#allocation6 + $0x8] sm:$0xff]  ;;  %v48_v1 = vld [vmem:[#allocation6] sm:$0xff]  ;;  %v363_v6 = vmov 0   ;;  %v139_v8 = vlaneseq }
   0xe   :  { %v44_v2 = vld [vmem:[%s463_s2] sm:$0xff]  ;;  %307 = vmatprep.subr.msk.mxu0 %vm50_vm0, %v49_v0  ;;  %v45_v4 = vld [vmem:[%s463_s2 + $0x8] sm:$0xff]  ;;  %321 = vset.pattern.permute.xlu0 %v363_v6  ;;  %vm35_vm1 = vcmask 7168   ;;  %v364_v7 = vmov -1e+30   ;;  %vm180_vm7 = vcmask 130048  }
   0xf   :  { %v46_v3 = vmul.f32 14.285714, %v44_v2  ;;  %308 = vmatpush3.xpose.msk.msra.mxu0 %vm50_vm0, %v49_v0  ;;  %v47_v5 = vmul.f32 14.285714, %v45_v4  ;;  %320 = vset.pattern.permute.xlu1 %v363_v6  ;;  %36 = vst.msk [vmem:[#allocation2] sm:$0xff] %vm35_vm1, %v364_v7  ;;  %37 = vst.msk [vmem:[#allocation2 + $0x8] sm:$0xff] %vm35_vm1, %v364_v7 }
  0x10   :  { %309 = vmatprep.subr.msk.mxu0 %vm50_vm0, %v48_v1  ;;  %v140_v9 = vshrl.u32 %v139_v8, 7  ;;  %v147_v10 = vand.u32 127, %v139_v8  ;;  %v365_v20 = vmov 0.0   ;;  %v155_v21 = vld [vmem:[%s461_s0] sm:$0xff]  ;;  %v156_v30 = vld [vmem:[%s461_s0 + $0x8] sm:$0xff] }
  0x11   :  { %311 = vmatprep.mubr.msk.f32.mxu0 %vm50_vm0, %v46_v3  ;;  %38 = vst.msk [vmem:[#allocation3] sm:$0xff] %vm35_vm1, %v365_v20  ;;  %39 = vst.msk [vmem:[#allocation3 + $0x8] sm:$0xff] %vm35_vm1, %v365_v20  ;;  %v300_v31 = vld [vmem:[%s462_s1] ss:$0 sm:$0xff] }
  0x12   :  { %v141_v11 = vadd.s32 8, %v140_v9  ;;  %vm151_vm2 = vcmp.ne.s32.totalorder %v140_v9, %v147_v10  ;;  %vm150_vm3 = vcmp.lt.s32.totalorder %v147_v10, 16  ;;  %40 = vst.msk [vmem:[#allocation4] sm:$0xff] %vm35_vm1, %v365_v20  ;;  %41 = vst.msk [vmem:[#allocation4 + $0x8] sm:$0xff] %vm35_vm1, %v365_v20 }
  0x13   :  { %310 = vmatpush3.xpose.msk.msra.mxu0 %vm50_vm0, %v48_v1  ;;  %vm404_vm5 = vmand %vm150_vm3, %vm151_vm2  ;;  %42 = vst.msk [vmem:[#allocation5] sm:$0xff] %vm35_vm1, %v365_v20 }
  0x14   :  { %vm152_vm4 = vcmp.ne.s32.totalorder %v141_v11, %v147_v10  ;;  %43 = vst.msk [vmem:[#allocation5 + $0x8] sm:$0xff] %vm35_vm1, %v365_v20 }
  0x15   :  { %vm408_vm6 = vmand %vm150_vm3, %vm152_vm4 }
  0x16   :  { %312 = vmatmul.mubr.msk.f32.vlgmr.msra.gmra.mxu0 %vm50_vm0, %v47_v5  ;;  %v178_v22 = vld [vmem:[#allocation2] sm:$0xff]  ;;  %v179_v25 = vld [vmem:[#allocation2 + $0x8] sm:$0xff] }
  0x18   :  { %v211_v58 = vld [vmem:[#allocation3] sm:$0xff]  ;;  %v212_v62 = vld [vmem:[#allocation3 + $0x8] sm:$0xff] }
  0x19   :  { %v228_v8 = vld [vmem:[#allocation4] sm:$0xff]  ;;  %v229_v13 = vld [vmem:[#allocation4 + $0x8] sm:$0xff] }
  0x1a   :  { %v242_v53 = vld [vmem:[#allocation5] sm:$0xff] }
  0x1b   :  { %v243_v3 = vld [vmem:[#allocation5 + $0x8] sm:$0xff] }
  0xd6   :  { %v402_v12 = vpop.f32.mrf.mxu0 }
  0xd7   :  { %v177_v18 = vsel %vm408_vm6, %v402_v12, -1e+30 }
  0xd8   :  { %v129_v14 = vpop.f32.mrf.mxu0  ;;  %v184_v19 = vsel %vm180_vm7, %v177_v18, -inf }
  0xd9   :  { %v176_v16 = vsel %vm404_vm5, %v129_v14, -1e+30 }
  0xda   :  { %v181_v17 = vsel %vm180_vm7, %v176_v16, -inf }
  0xdb   :  { %182 = vmax.xlane.f32.xlu0 %v181_v17 }
  0xdf   :  { %185 = vmax.xlane.f32.xlu0 %v184_v19 }
  0xf5   :  { %159 = vperm.xlu0 %321, %v155_v21  }
 0x164   :  { %v183_v23 = vpop.xlane.xlu0 %182 }
 0x165   :  { %v187_v24 = vmax.f32 %v178_v22, %v183_v23 }
 0x167   :  { %v189_v26 = vsub.f32 %v178_v22, %v187_v24  ;;  %226 = vst.msk [vmem:[#allocation2] sm:$0xff] %vm35_vm1, %v187_v24  ;;  %197 = vperm.xlu1 %320, %v187_v24  }
 0x168   :  { %v186_v27 = vpop.xlane.xlu0 %185 }
 0x169   :  { %v188_v28 = vmax.f32 %v179_v25, %v186_v27  ;;  %v191_v55 = vmul.f32 1.442695, %v189_v26 }
 0x16b   :  { %v190_v29 = vsub.f32 %v179_v25, %v188_v28  ;;  %227 = vst.msk [vmem:[#allocation2 + $0x8] sm:$0xff] %vm35_vm1, %v188_v28  ;;  %202 = vperm.xlu1 %320, %v188_v28  }
 0x16d   :  { %v193_v56 = vmul.f32 1.442695, %v190_v29 }
 0x16f   :  { %162 = vperm.xlu1 %320, %v156_v30  }
 0x170   :  { %v160_v32 = vpop.permute.xlu0 %159 }
 0x171   :  { %vm168_vm8 = vcmp.eq.s32.totalorder %v160_v32, %v300_v31 }
 0x172   :  { %vm170_vm9 = vmand %vm404_vm5, %vm168_vm8  ;;  %v258_v26 = vld [vmem:[#allocation2 + $0x8] sm:$0xff] }
 0x173   :  { %v301_v33 = vsel %vm170_vm9, 1.0, %v365_v20 }
 0x174   :  { %v244_v34 = vsel %vm180_vm7, %v301_v33, 0.0  ;;  %v230_v48 = vmul.f32 %v301_v33, %v129_v14 }
 0x175   :  { %245 = vadd.xlane.f32.xlu0 %v244_v34 }
 0x176   :  { %v232_v49 = vsel %vm180_vm7, %v230_v48, 0.0 }
 0x1e2   :  { %v198_v35 = vpop.permute.xlu1 %197 }
 0x1e3   :  { %v205_v36 = vsub.f32 %v176_v16, %v198_v35 }
 0x1e5   :  { %v207_v37 = vmul.f32 1.442695, %v205_v36 }
 0x1e6   :  { %v203_v38 = vpop.permute.xlu1 %202 }
 0x1e7   :  { %322 = vpow2.f32 %v207_v37  ;;  %v206_v39 = vsub.f32 %v177_v18, %v203_v38 }
 0x1e9   :  { %v209_v40 = vmul.f32 1.442695, %v206_v39 }
 0x1ea   :  { %v163_v41 = vpop.permute.xlu1 %162 }
 0x1eb   :  { %324 = vpow2.f32 %v209_v40  ;;  %vm169_vm10 = vcmp.eq.s32.totalorder %v163_v41, %v300_v31 }
 0x1ec   :  { %vm171_vm11 = vmand %vm408_vm6, %vm169_vm10  ;;  %326 = vpow2.f32 %v191_v55 }
 0x1ed   :  { %v302_v46 = vsel %vm171_vm11, 1.0, %v365_v20  ;;  %328 = vpow2.f32 %v193_v56  ;;  %v257_v20 = vld [vmem:[#allocation2] sm:$0xff] }
 0x1ee   :  { %v247_v47 = vsel %vm180_vm7, %v302_v46, 0.0  ;;  %v231_v50 = vmul.f32 %v402_v12, %v302_v46 }
 0x1f0   :  { %v235_v51 = vsel %vm180_vm7, %v231_v50, 0.0 }
 0x1f4   :  { %v323_v42 = vpop.eup %322 }
 0x1f5   :  { %v215_v43 = vsel %vm180_vm7, %v323_v42, 0.0 }
 0x1f6   :  { %216 = vadd.xlane.f32.xlu1 %v215_v43 }
 0x1f8   :  { %v325_v44 = vpop.eup %324 }
 0x1f9   :  { %v218_v45 = vsel %vm180_vm7, %v325_v44, 0.0  ;;  %v327_v57 = vpop.eup %326 }
 0x1fa   :  { %219 = vadd.xlane.f32.xlu1 %v218_v45  ;;  %v213_v59 = vmul.f32 %v327_v57, %v211_v58  ;;  %v329_v60 = vpop.eup %328 }
 0x1fb   :  { %v214_v0 = vmul.f32 %v329_v60, %v212_v62 }
 0x1fe   :  { %248 = vadd.xlane.f32.xlu1 %v247_v47  ;;  %v246_v52 = vpop.xlane.xlu0 %245 }
 0x1ff   :  { %v250_v54 = vadd.f32 %v246_v52, %v242_v53 }
 0x201   :  { %252 = vst.msk [vmem:[#allocation5] sm:$0xff] %vm35_vm1, %v250_v54 }
 0x202   :  { %233 = vadd.xlane.f32.xlu1 %v232_v49 }
 0x206   :  { %236 = vadd.xlane.f32.xlu1 %v235_v51 }
 0x208   :  { %v267_v4 = vld [vmem:[#allocation5] sm:$0xff] }
 0x209   :  { %vm269_vm12 = vcmp.lt.f32.partialorder %v267_v4, 1e-06 }
 0x20a   :  { %v271_v12 = vsel %vm269_vm12, 1.0, %v267_v4 }
 0x27f   :  { %v217_v61 = vpop.xlane.xlu1 %216 }
 0x280   :  { %v221_v63 = vadd.f32 %v217_v61, %v213_v59 }
 0x282   :  { %224 = vst.msk [vmem:[#allocation3] sm:$0xff] %vm35_vm1, %v221_v63 }
 0x283   :  { %v220_v1 = vpop.xlane.xlu1 %219 }
 0x284   :  { %v222_v2 = vadd.f32 %v220_v1, %v214_v0 }
 0x286   :  { %225 = vst.msk [vmem:[#allocation3 + $0x8] sm:$0xff] %vm35_vm1, %v222_v2 }
 0x287   :  { %v249_v5 = vpop.xlane.xlu1 %248 }
 0x288   :  { %v251_v6 = vadd.f32 %v249_v5, %v243_v3 }
 0x289   :  { %v259_v7 = vld [vmem:[#allocation3] sm:$0xff] }
 0x28a   :  { %330 = vlog2.f32 %v259_v7  ;;  %253 = vst.msk [vmem:[#allocation5 + $0x8] sm:$0xff] %vm35_vm1, %v251_v6 }
 0x28b   :  { %v234_v9 = vpop.xlane.xlu1 %233 }
 0x28c   :  { %v238_v10 = vadd.f32 %v234_v9, %v228_v8 }
 0x28d   :  { %v260_v11 = vld [vmem:[#allocation3 + $0x8] sm:$0xff] }
 0x28e   :  { %332 = vlog2.f32 %v260_v11  ;;  %240 = vst.msk [vmem:[#allocation4] sm:$0xff] %vm35_vm1, %v238_v10 }
 0x28f   :  { %v237_v14 = vpop.xlane.xlu1 %236  ;;  %334 = vrcp.f32 %v271_v12 }
 0x290   :  { %v239_v15 = vadd.f32 %v237_v14, %v229_v13 }
 0x291   :  { %v268_v16 = vld [vmem:[#allocation5 + $0x8] sm:$0xff] }
 0x292   :  { %vm270_vm13 = vcmp.lt.f32.partialorder %v268_v16, 1e-06  ;;  %241 = vst.msk [vmem:[#allocation4 + $0x8] sm:$0xff] %vm35_vm1, %v239_v15 }
 0x293   :  { %v272_v17 = vsel %vm270_vm13, 1.0, %v268_v16 }
 0x294   :  { %336 = vrcp.f32 %v272_v17 }
 0x295   :  { %v273_v27 = vld [vmem:[#allocation4] sm:$0xff] }
 0x297   :  { %v331_v18 = vpop.eup %330 }
 0x298   :  { %v262_v19 = vmul.f32 0.6931472, %v331_v18 }
 0x299   :  { %v274_v32 = vld [vmem:[#allocation4 + $0x8] sm:$0xff] }
 0x29a   :  { %v265_v21 = vadd.f32 %v262_v19, %v257_v20 }
 0x29b   :  { %v333_v22 = vpop.eup %332 }
 0x29c   :  { %v264_v23 = vmul.f32 0.6931472, %v333_v22  ;;  %v275_v24 = vmul.f32 %v267_v4, %v265_v21  ;;  %v335_v25 = vpop.eup %334 }
 0x29e   :  { %v266_v28 = vadd.f32 %v264_v23, %v258_v26  ;;  %v277_v29 = vsub.f32 %v273_v27, %v275_v24 }
 0x2a0   :  { %v276_v30 = vmul.f32 %v268_v16, %v266_v28  ;;  %v280_v31 = vmul.f32 %v335_v25, %v277_v29 }
 0x2a1   :  { %v337_v35 = vpop.eup %336 }
 0x2a2   :  { %v283_v33 = vmul.f32 -1.0, %v280_v31  ;;  %v278_v34 = vsub.f32 %v274_v32, %v276_v30 }
 0x2a4   :  { %289 = vst.msk [vmem:[%s465_s4] sm:$0xff] %vm35_vm1, %v283_v33  ;;  %v282_v36 = vmul.f32 %v337_v35, %v278_v34 }
 0x2a6   :  { %v284_v37 = vmul.f32 -1.0, %v282_v36 }
 0x2a8   :  { %290 = vst.msk [vmem:[%s465_s4 + $0x8] sm:$0xff] %vm35_vm1, %v284_v37 }
 0x2a9   :  { %295 = vsyncpa [#allocation7], 1 }

</bundles_post_ra>
